<compile_context>
chip_gen: v7x
topology: tpu7x:2x2x1
jax: 0.10.0
libtpu: 0.0.40
codegen_flags: <defaults>
</compile_context>

<pallas_src>
import functools

import jax
import jax.numpy as jnp
from jax.experimental import pallas as pl
from jax.experimental.pallas import tpu as pltpu


def _round_up(x, m):
    return ((x + m - 1) // m) * m


def _vmem_physical_bytes():
    """Physical VMEM per core; conservative 64 MiB (v7x) if the query fails."""
    try:
        return int(pltpu.get_tpu_info().vmem_capacity_bytes)
    except Exception:  # noqa: BLE001 - any failure -> conservative default
        return 64 << 20


def _pick_block_k(K):
    """Full K when small; otherwise the largest 128-aligned divisor <= 2048."""
    if K <= 4096:
        return K
    for d in range(2048, 127, -128):
        if K % d == 0:
            return d
    return 2048  # rare fallback: K has no 128-aligned divisor -> pad K


def _pick_block_b(B_pad, cap):
    """Largest divisor of B_pad that is a multiple of 8 and <= cap.

    When B_pad >= 256, prefer >= 2 batch tiles so a 2-TensorCore chip (v7x)
    can shard the parallel axis.
    """
    cap = min(cap, B_pad)
    cap -= cap % 8
    candidates = [d for d in range(cap, 7, -8) if B_pad % d == 0]
    if not candidates:
        return 8  # unreachable: B_pad is always a multiple of 8
    if B_pad >= 256:
        for d in candidates:
            if d < B_pad:  # gives n_b >= 2
                return d
    return candidates[0]


# ----------------------------------------------------------------------------
# Kernels
# ----------------------------------------------------------------------------
def _linear_bias_kernel(x_ref, w_ref, b_ref, o_ref):
    # Fast path: whole K resident.  x:(tb,K) w:(K,N) b:(1,N) o:(tb,N)
    o_ref[...] = (
        jnp.dot(x_ref[...], w_ref[...], preferred_element_type=jnp.float32)
        + b_ref[...].astype(jnp.float32)
    ).astype(o_ref.dtype)


def _linear_bias_ksplit_kernel(x_ref, w_ref, b_ref, o_ref, acc_ref):
    # Streamed K.  x:(tb,tk) w:(tk,N) b:(1,N) o:(tb,N) acc:(tb,N) f32
    k = pl.program_id(1)

    @pl.when(k == 0)
    def _():
        # Fold the bias into the accumulator init (saves an epilogue add).
        acc_ref[...] = jnp.broadcast_to(
            b_ref[...].astype(jnp.float32), acc_ref.shape
        )

    acc_ref[...] += jnp.dot(
        x_ref[...], w_ref[...], preferred_element_type=jnp.float32
    )

    @pl.when(k == pl.num_programs(1) - 1)
    def _():
        o_ref[...] = acc_ref[...].astype(o_ref.dtype)


# ----------------------------------------------------------------------------
# Wrapper
# ----------------------------------------------------------------------------
@functools.partial(jax.jit, static_argnames=("block_b", "block_k", "compute_dtype"))
def linear_dim_reduction(x, weight_t, bias, *, block_b=None, block_k=None,
                         compute_dtype=None):
    """y = x @ weight_t + bias; Dropout(p=0.0) is the identity at forward time.

    x:        (..., input_size)
    weight_t: (input_size, output_size)   (PyTorch weight transposed)
    bias:     (output_size,)
    compute_dtype: optional bf16 MXU-input path (f32 accumulation, output keeps
                   x.dtype).
    """
    orig_shape = x.shape
    out_dtype = x.dtype
    K = orig_shape[-1]
    x = x.reshape(-1, K)
    B = x.shape[0]
    K2, N = weight_t.shape
    assert K == K2
    assert bias.shape == (N,)

    if compute_dtype is not None:
        x = x.astype(compute_dtype)
        weight_t = weight_t.astype(compute_dtype)

    # ---- K tiling ------------------------------------------------------------
    if block_k is None:
        block_k = _pick_block_k(K)
    assert block_k == K or block_k % 128 == 0, "streamed block_k must be 128-aligned"
    K_pad = _round_up(K, block_k)
    n_k = K_pad // block_k
    if K_pad != K:
        # Fallback only (K has no lane-aligned divisor): zero-pad K.
        x = jnp.pad(x, ((0, 0), (0, K_pad - K)))
        weight_t = jnp.pad(weight_t, ((0, K_pad - K), (0, 0)))

    # ---- B tiling: pad B only to a multiple of 8; block_b divides B_pad ------
    vmem_cap = _vmem_physical_bytes()
    if block_b is None:
        B_pad = _round_up(B, 8)
        cap_b = 512 if vmem_cap <= (64 << 20) else 1024   # v7x vs v5e/v6e
        block_b = _pick_block_b(B_pad, cap_b)
    else:
        B_pad = _round_up(B, block_b)
    if B_pad != B:
        x = jnp.pad(x, ((0, B_pad - B), (0, 0)))

    x_isz = jnp.dtype(x.dtype).itemsize
    w_isz = jnp.dtype(weight_t.dtype).itemsize
    b_isz = jnp.dtype(bias.dtype).itemsize
    o_isz = jnp.dtype(out_dtype).itemsize

    def _budget(bb):
        if n_k == 1:
            return (2 * bb * K_pad * x_isz       # x tile (double-buffered)
                    + K_pad * N * w_isz          # weight (single buffer, invariant)
                    + N * b_isz                  # bias row
                    + 2 * bb * N * o_isz)        # out tile (double-buffered)
        return (2 * bb * block_k * x_isz
                + 2 * block_k * N * w_isz
                + N * b_isz
                + 2 * bb * N * o_isz
                + bb * N * 4)                    # f32 accumulator scratch

    # Keep the tile budget under ~70% of physical VMEM (generation-aware).
    limit = int(0.7 * vmem_cap)
    while block_b > 8 and _budget(block_b) > limit:
        nxt = next((d for d in range(block_b - 8, 7, -8) if B_pad % d == 0), None)
        if nxt is None:
            break
        block_b = nxt

    n_b = B_pad // block_b
    bias2d = bias.reshape(1, N)

    vmem_limit = min(
        max(int(_budget(block_b) * 1.25) + (1 << 20), 32 << 20),
        int(0.9 * vmem_cap),   # never exceeds v7x's 64 MiB physical VMEM
    )

    cost = pl.CostEstimate(
        flops=2 * B * K * N,
        transcendentals=0,
        bytes_accessed=(x_isz * B * K
                        + w_isz * K * N * (n_b if n_k > 1 else 1)  # weight re-reads
                        + b_isz * N
                        + o_isz * B * N),
    )

    if n_k == 1:
        # Fast path: no accumulator round-trip, no K grid axis, no branches.
        grid_spec = pltpu.PrefetchScalarGridSpec(
            num_scalar_prefetch=0,
            grid=(n_b,),
            in_specs=[
                pl.BlockSpec((block_b, K_pad), lambda i: (i, 0)),          # x tile
                pl.BlockSpec((K_pad, N), lambda i: (0, 0),                 # weight
                             pipeline_mode=pl.Buffered(1)),
                pl.BlockSpec((1, N), lambda i: (0, 0),                     # bias
                             pipeline_mode=pl.Buffered(1)),
            ],
            out_specs=pl.BlockSpec((block_b, N), lambda i: (i, 0)),
        )
        kernel = _linear_bias_kernel
        dim_sem = ("parallel",)
    else:
        grid_spec = pltpu.PrefetchScalarGridSpec(
            num_scalar_prefetch=0,
            grid=(n_b, n_k),
            in_specs=[
                pl.BlockSpec((block_b, block_k), lambda i, k: (i, k)),     # x tile
                pl.BlockSpec((block_k, N), lambda i, k: (k, 0)),           # weight
                pl.BlockSpec((1, N), lambda i, k: (0, 0),                  # bias
                             pipeline_mode=pl.Buffered(1)),
            ],
            out_specs=pl.BlockSpec((block_b, N), lambda i, k: (i, 0)),
            scratch_shapes=[pltpu.VMEM((block_b, N), jnp.float32)],
        )
        kernel = _linear_bias_ksplit_kernel
        dim_sem = ("parallel", "arbitrary")

    out = pl.pallas_call(
        kernel,
        out_shape=jax.ShapeDtypeStruct((B_pad, N), out_dtype),
        grid_spec=grid_spec,
        compiler_params=pltpu.CompilerParams(
            dimension_semantics=dim_sem,
            vmem_limit_bytes=vmem_limit,
        ),
        cost_estimate=cost,
    )(x, weight_t, bias2d)

    if B_pad != B:
        out = out[:B]
    return out.reshape(orig_shape[:-1] + (N,))


if __name__ == "__main__":
    # Small shapes consistent with the module: Linear(input_size=256, output_size=128)
    B, input_size, output_size = 8, 256, 128

    key = jax.random.PRNGKey(0)
    k_x, k_w, k_b = jax.random.split(key, 3)

    x = jax.random.normal(k_x, (B, input_size), dtype=jnp.float32)

    # Deterministic parameter init (mimics nn.Linear's uniform(-1/sqrt(in), 1/sqrt(in)))
    bound = 1.0 / jnp.sqrt(jnp.float32(input_size))
    weight = jax.random.uniform(
        k_w, (output_size, input_size), minval=-bound, maxval=bound, dtype=jnp.float32
    )
    bias = jax.random.uniform(
        k_b, (output_size,), minval=-bound, maxval=bound, dtype=jnp.float32
    )
    weight_t = weight.T  # (input_size, output_size) for the kernel

    # 1) Exact f32 path (n_k == 1 fast path).
    y = jax.block_until_ready(linear_dim_reduction(x, weight_t, bias))
    y_ref = x @ weight_t + bias  # dropout p=0.0 is the identity
    assert y.shape == (B, output_size)
    assert jnp.allclose(y, y_ref, atol=1e-4, rtol=1e-5)

    # 2) Batch not a multiple of 8 (exercises the minimal-padding path).
    B2 = 10
    x2 = jax.random.normal(jax.random.PRNGKey(1), (B2, input_size), dtype=jnp.float32)
    y2 = jax.block_until_ready(linear_dim_reduction(x2, weight_t, bias))
    y2_ref = x2 @ weight_t + bias
    assert y2.shape == (B2, output_size)
    assert jnp.allclose(y2, y2_ref, atol=1e-4, rtol=1e-5)

    # 3) K-streamed accumulator path (forced small block_k).
    y3 = jax.block_until_ready(
        linear_dim_reduction(x, weight_t, bias, block_k=128)
    )
    assert jnp.allclose(y3, y_ref, atol=1e-4, rtol=1e-5)

    # 4) bf16 MXU-input path (f32 accumulation), looser tolerance.
    y4 = jax.block_until_ready(
        linear_dim_reduction(x, weight_t, bias, compute_dtype=jnp.bfloat16)
    )
    assert jnp.allclose(y4, y_ref, atol=5e-2, rtol=5e-2)

    print("KERNEL_OK")
</pallas_src>

<mosaic_0001>
module attributes {stable_mosaic.version = 11 : i64} {
  func.func @_linear_bias_kernel(%arg0: i32, %arg1: memref<8x256xf32, #tpu.memory_space<vmem>>, %arg2: memref<256x128xf32, #tpu.memory_space<vmem>>, %arg3: memref<1x128xf32, #tpu.memory_space<vmem>>, %arg4: memref<8x128xf32, #tpu.memory_space<vmem>>) attributes {dimension_semantics = [#tpu.dimension_semantics<parallel>], iteration_bounds = array<i64: 1>, scalar_prefetch = 0 : i64, scratch_operands = 0 : i64, tpu.core_type = #tpu.core_type<tc>, window_params = [{transform_indices = @transform_0, window_bounds = array<i64: 8, 256>}, {pipeline_mode = #tpu.pipeline_mode<synchronous>, transform_indices = @transform_1, window_bounds = array<i64: 256, 128>}, {pipeline_mode = #tpu.pipeline_mode<synchronous>, transform_indices = @transform_2, window_bounds = array<i64: 1, 128>}, {transform_indices = @transform_3, window_bounds = array<i64: 8, 128>}]} {
    %c0 = arith.constant 0 : index
    %c0_0 = arith.constant 0 : index
    %0 = vector.load %arg1[%c0, %c0_0] : memref<8x256xf32, #tpu.memory_space<vmem>>, vector<8x256xf32>
    %c0_1 = arith.constant 0 : index
    %c0_2 = arith.constant 0 : index
    %1 = vector.load %arg2[%c0_1, %c0_2] : memref<256x128xf32, #tpu.memory_space<vmem>>, vector<256x128xf32>
    %cst = arith.constant dense<0.000000e+00> : vector<8x128xf32>
    %2 = tpu.matmul %0, %1, %cst {dimension_numbers = #tpu.dot_dimension_numbers<[1], [0], [0], [1], [0, 0, 1, 1], [], []>} : vector<8x256xf32>, vector<256x128xf32>, vector<8x128xf32> -> vector<8x128xf32>
    %c0_3 = arith.constant 0 : index
    %c0_4 = arith.constant 0 : index
    %3 = vector.load %arg3[%c0_3, %c0_4] : memref<1x128xf32, #tpu.memory_space<vmem>>, vector<1x128xf32>
    %4 = vector.broadcast %3 : vector<1x128xf32> to vector<8x128xf32>
    %5 = arith.addf %2, %4 : vector<8x128xf32>
    %c0_5 = arith.constant 0 : index
    %c0_6 = arith.constant 0 : index
    %6 = vector.load %arg4[%c0_5, %c0_6] : memref<8x128xf32, #tpu.memory_space<vmem>>, vector<8x128xf32>
    tpu.vector_store %arg4[%c0_5, %c0_6], %5 {strides = array<i32>} : memref<8x128xf32, #tpu.memory_space<vmem>>, vector<8x128xf32>,
    return
  }
  func.func @transform_0(%arg0: i32) -> (i32, i32) {
    %c0_i32 = arith.constant 0 : i32
    %c0_i32_0 = arith.constant 0 : i32
    return %arg0, %c0_i32 : i32, i32
  }
  func.func @transform_1(%arg0: i32) -> (i32, i32) {
    %c0_i32 = arith.constant 0 : i32
    %c0_i32_0 = arith.constant 0 : i32
    %c0_i32_1 = arith.constant 0 : i32
    return %c0_i32, %c0_i32_0 : i32, i32
  }
  func.func @transform_2(%arg0: i32) -> (i32, i32) {
    %c0_i32 = arith.constant 0 : i32
    %c0_i32_0 = arith.constant 0 : i32
    %c0_i32_1 = arith.constant 0 : i32
    return %c0_i32, %c0_i32_0 : i32, i32
  }
  func.func @transform_3(%arg0: i32) -> (i32, i32) {
    %c0_i32 = arith.constant 0 : i32
    %c0_i32_0 = arith.constant 0 : i32
    return %arg0, %c0_i32 : i32, i32
  }
}

</mosaic_0001>

<bundles_post_ra>
// kernel: linear_dim_reduction.1
= control target key start
LH: loop header
LB: loop body
LE: loop exit
PB: predicated region body
PF: predicated region fallthrough
CT: control target
= control target key end

     0   :  { %8 = vsyncpa [#allocation3], 0  ;;  %s385_s0 = inlined_call_operand.hbm [shape: f32[8,256], index: 0, kind: input, shape index: {}]   ;;  %s386_s1 = inlined_call_operand.hbm [shape: f32[256,128], index: 1, kind: input, shape index: {}]   ;;  %s387_s2 = inlined_call_operand.vmem [shape: f32[1,128], index: 2, kind: input, shape index: {}]   ;;  %s388_s3 = inlined_call_operand.hbm [shape: f32[8,128], index: 3, kind: output, shape index: {}]  }
   0x1   :  { %9 = vsyncpa [#allocation6], 0 }
   0x2   :  { %10 = vsyncpa [#allocation4], 0  ;;  %s314_s12 = smov [#allocation2]   ;;  %s315_s14 = smov [#allocation5]  }
   0x3   :  { %s17_s13 = sshll.u32 %s314_s12, 4  ;;  %s26_s15 = sshll.u32 %s315_s14, 4  ;;  %s18_s13 = int_to_ptr.vmem [resolvable:$true] %s17_s13  ;;  %s339_s15 = int_to_ptr.vmem [resolvable:$true] %s26_s15 }
   0x4   :  { %s242_s18 = scalar_lea.hbm %s385_s0, 256 }
   0x5   :  { %p243_p0 = scmp.ne.s32.totalorder %s385_s0, %s242_s18  ;;  %p246_p1 = scmp.lt.u32.totalorder %s242_s18, %s385_s0 }
   0x7   :  { %p248_p2 = pnand %p246_p1, %p243_p0 }
   0x9   :  { %251 = shalt.err (!%p248_p2)
}
   0xa   :  { %s252_s23 = scalar_lea.vmem %s18_s13, 256  ;;  %p257_p4 = scmp.lt.s32.totalorder %s18_s13, %s18_s13 }
   0xb   :  { %p253_p3 = scmp.ne.s32.totalorder %s18_s13, %s252_s23  ;;  %p258_p5 = scmp.lt.s32.totalorder %s252_s23, %s252_s23 }
   0xd   :  { %p259_p6 = por %p258_p5, %p257_p4 }
   0xf   :  { %p260_p7 = pnand %p259_p6, %p253_p3 }
  0x11   :  { %263 = shalt.err (!%p260_p7)
}
  0x12   :  { %20 = dma.hbm_to_vmem [thread:$0]  %s385_s0, 256, %s18_s13, [#allocation3]  }
  0x13   :  { %s264_s28 = scalar_lea.hbm %s386_s1, 4096 }
  0x14   :  { %p265_p8 = scmp.ne.s32.totalorder %s386_s1, %s264_s28  ;;  %p268_p9 = scmp.lt.u32.totalorder %s264_s28, %s386_s1 }
  0x16   :  { %p270_p10 = pnand %p268_p9, %p265_p8 }
  0x18   :  { %273 = shalt.err (!%p270_p10)
}
  0x19   :  { %s274_s6 = scalar_lea.vmem %s339_s15, 4096  ;;  %p279_p12 = scmp.lt.s32.totalorder %s339_s15, %s339_s15 }
  0x1a   :  { %p275_p11 = scmp.ne.s32.totalorder %s339_s15, %s274_s6  ;;  %p280_p13 = scmp.lt.s32.totalorder %s274_s6, %s274_s6 }
  0x1c   :  { %p281_p0 = por %p280_p13, %p279_p12 }
  0x1e   :  { %p282_p1 = pnand %p281_p0, %p275_p11 }
  0x20   :  { %285 = shalt.err (!%p282_p1)
}
  0x21   :  { %s316_s0 = smov 128   ;;  %s317_s7 = smov 8  }
  0x22   :  { %32 = dma.hbm_to_vmem [thread:$0]  %s386_s1, 4096, %s339_s15, [#allocation6], %s316_s0, %s316_s0, %s317_s7  }
  0x23   :  { %308 = dma.done.wait [#allocation3], 256  }
  0x24   :  { %309 = vsyncadd [#allocation3], 4294967040 }
  0x25   :  { %310 = dma.done.wait [#allocation6], 4096  }
  0x26   :  { %311 = vsyncadd [#allocation6], 4294963200  ;;  %v59_v0 = vld [vmem:[#allocation5 + $0x80] sm:$0xff]  ;;  %v60_v1 = vld [vmem:[#allocation5 + $0x88] sm:$0xff]  ;;  %s318_s11 = smov [#allocation7]  }
  0x27   :  { %v43_v2 = vld [vmem:[#allocation5] sm:$0xff]  ;;  %v205_v3 = vpack.c.bf16 %v60_v1, %v59_v0  ;;  %v44_v4 = vld [vmem:[#allocation5 + $0x8] sm:$0xff]  ;;  %v61_v5 = vld [vmem:[#allocation5 + $0x90] sm:$0xff]  ;;  %s159_s12 = sshll.u32 %s318_s11, 4  ;;  %s160_s12 = int_to_ptr.vmem [resolvable:$true] %s159_s12 }
  0x28   :  { %v62_v6 = vld [vmem:[#allocation5 + $0x98] sm:$0xff]  ;;  %v207_v7 = vpack.c.bf16 %v44_v4, %v43_v2  ;;  %v45_v9 = vld [vmem:[#allocation5 + $0x10] sm:$0xff]  ;;  %v63_v11 = vld [vmem:[#allocation5 + $0xa0] sm:$0xff]  ;;  %s286_s13 = scalar_lea.vmem %s160_s12, 128  ;;  %p291_p3 = scmp.lt.s32.totalorder %s160_s12, %s160_s12 }
  0x29   :  { %v209_v8 = vpack.c.bf16 %v62_v6, %v61_v5  ;;  %v46_v10 = vld [vmem:[#allocation5 + $0x18] sm:$0xff]  ;;  %206 = vmatprep.subr.bf16.mxu0 %v205_v3  ;;  %v64_v12 = vld [vmem:[#allocation5 + $0xa8] sm:$0xff]  ;;  %v47_v15 = vld [vmem:[#allocation5 + $0x20] sm:$0xff]  ;;  %p287_p2 = scmp.ne.s32.totalorder %s160_s12, %s286_s13  ;;  %p292_p4 = scmp.lt.s32.totalorder %s286_s13, %s286_s13 }
  0x2a   :  { %208 = vmatpush3.bf16.msra.mxu0 %v207_v7  ;;  %v211_v13 = vpack.c.bf16 %v46_v10, %v45_v9  ;;  %v213_v14 = vpack.c.bf16 %v64_v12, %v63_v11  ;;  %v48_v16 = vld [vmem:[#allocation5 + $0x28] sm:$0xff]  ;;  %v65_v17 = vld [vmem:[#allocation5 + $0xb0] sm:$0xff]  ;;  %v66_v18 = vld [vmem:[#allocation5 + $0xb8] sm:$0xff] }
  0x2b   :  { %210 = vmatprep.subr.bf16.mxu0 %v209_v8  ;;  %v215_v19 = vpack.c.bf16 %v48_v16, %v47_v15  ;;  %v217_v20 = vpack.c.bf16 %v66_v18, %v65_v17  ;;  %v49_v21 = vld [vmem:[#allocation5 + $0x30] sm:$0xff]  ;;  %v50_v22 = vld [vmem:[#allocation5 + $0x38] sm:$0xff]  ;;  %v67_v23 = vld [vmem:[#allocation5 + $0xc0] sm:$0xff]  ;;  %p293_p5 = por %p292_p4, %p291_p3 }
  0x2c   :  { %v68_v24 = vld [vmem:[#allocation5 + $0xc8] sm:$0xff]  ;;  %v42_v25 = vld [vmem:[#allocation2 + $0x8] sm:$0xff]  ;;  %v219_v26 = vpack.c.bf16 %v50_v22, %v49_v21  ;;  %v51_v28 = vld [vmem:[#allocation5 + $0x40] sm:$0xff] }
  0x2d   :  { %146 = vmatprep.mubr.f32.mxu0 %v42_v25  ;;  %v221_v27 = vpack.c.bf16 %v68_v24, %v67_v23  ;;  %v52_v29 = vld [vmem:[#allocation5 + $0x48] sm:$0xff]  ;;  %v69_v30 = vld [vmem:[#allocation5 + $0xd0] sm:$0xff]  ;;  %v70_v31 = vld [vmem:[#allocation5 + $0xd8] sm:$0xff]  ;;  %p294_p6 = pnand %p293_p5, %p287_p2 }
  0x2e   :  { %212 = vmatpush3.bf16.msra.mxu0 %v211_v13  ;;  %v223_v32 = vpack.c.bf16 %v52_v29, %v51_v28  ;;  %v225_v33 = vpack.c.bf16 %v70_v31, %v69_v30  ;;  %v53_v34 = vld [vmem:[#allocation5 + $0x50] sm:$0xff]  ;;  %v54_v35 = vld [vmem:[#allocation5 + $0x58] sm:$0xff]  ;;  %v71_v36 = vld [vmem:[#allocation5 + $0xe0] sm:$0xff] }
  0x2f   :  { %214 = vmatprep.subr.bf16.mxu0 %v213_v14  ;;  %v72_v37 = vld [vmem:[#allocation5 + $0xe8] sm:$0xff]  ;;  %v227_v38 = vpack.c.bf16 %v54_v35, %v53_v34  ;;  %v55_v40 = vld [vmem:[#allocation5 + $0x60] sm:$0xff]  ;;  %v73_v42 = vld [vmem:[#allocation5 + $0xf0] sm:$0xff] }
  0x30   :  { %v229_v39 = vpack.c.bf16 %v72_v37, %v71_v36  ;;  %v56_v41 = vld [vmem:[#allocation5 + $0x68] sm:$0xff]  ;;  %v74_v43 = vld [vmem:[#allocation5 + $0xf8] sm:$0xff]  ;;  %v57_v46 = vld [vmem:[#allocation5 + $0x70] sm:$0xff] }
  0x31   :  { %v231_v44 = vpack.c.bf16 %v56_v41, %v55_v40  ;;  %v233_v45 = vpack.c.bf16 %v74_v43, %v73_v42  ;;  %v58_v47 = vld [vmem:[#allocation5 + $0x78] sm:$0xff]  ;;  %v41_v49 = vld [vmem:[#allocation2] sm:$0xff] }
  0x32   :  { %216 = vmatpush3.bf16.msra.mxu0 %v215_v19  ;;  %v235_v48 = vpack.c.bf16 %v58_v47, %v57_v46  ;;  %v169_v51 = vld [vmem:[%s387_s2] ss:$0 sm:$0xff] }
  0x33   :  { %218 = vmatprep.subr.bf16.mxu0 %v217_v20 }
  0x36   :  { %220 = vmatpush3.bf16.msra.mxu0 %v219_v26 }
  0x37   :  { %222 = vmatprep.subr.bf16.mxu0 %v221_v27 }
  0x3a   :  { %224 = vmatpush3.bf16.msra.mxu0 %v223_v32 }
  0x3b   :  { %226 = vmatprep.subr.bf16.mxu0 %v225_v33 }
  0x3e   :  { %228 = vmatpush3.bf16.msra.mxu0 %v227_v38 }
  0x3f   :  { %230 = vmatprep.subr.bf16.mxu0 %v229_v39 }
  0x42   :  { %232 = vmatpush3.bf16.msra.mxu0 %v231_v44 }
  0x43   :  { %234 = vmatprep.subr.bf16.mxu0 %v233_v45 }
  0x46   :  { %236 = vmatpush3.bf16.msra.mxu0 %v235_v48 }
  0x49   :  { %147 = vmatmul.mubr.f32.vlgmr.msra.gmra.mrb[0].mxu0 %v41_v49 }
 0x11c   :  { %v202_v50 = vpop.f32.mrb[0].mxu0 }
 0x11d   :  { %v203_v52 = vpop.f32.mrb[1].mxu0 }
 0x11e   :  { %v204_v53 = vadd.f32 %v203_v52, %v202_v50 }
 0x120   :  { %v149_v54 = vadd.f32 %v204_v53, %v169_v51 }
 0x122   :  { %152 = vst [vmem:[#allocation7] sm:$0xff] %v149_v54 }
 0x123   :  { %297 = shalt.err (!%p294_p6)
}
 0x124   :  { %s298_s16 = scalar_lea.hbm %s388_s3, 128 }
 0x125   :  { %p299_p7 = scmp.ne.s32.totalorder %s388_s3, %s298_s16  ;;  %p302_p8 = scmp.lt.u32.totalorder %s298_s16, %s388_s3 }
 0x127   :  { %p304_p9 = pnand %p302_p8, %p299_p7 }
 0x129   :  { %307 = shalt.err (!%p304_p9)
}
 0x12a   :  { %162 = dma.vmem_to_hbm [thread:$0]  %s160_s12, 128, %s388_s3, [#allocation4]  }
 0x12b   :  { %312 = dma.done.wait [#allocation4], 128  }
 0x12c   :  { %313 = vsyncadd [#allocation4], 4294967168 }
 0x12d   :  { %166 = vsyncpa [#allocation3], 1 }
 0x12e   :  { %167 = vsyncpa [#allocation6], 1 }
 0x12f   :  { %168 = vsyncpa [#allocation4], 1 }

</bundles_post_ra>
